<compile_context>
chip_gen: v5e
topology: v5e:2x2
jax: 0.10.0
libtpu: 0.0.40
codegen_flags: <defaults>
</compile_context>

<pallas_src>
import jax
import jax.numpy as jnp
from jax.experimental import pallas as pl
from jax.experimental.pallas import tpu as pltpu

INPUT_SIZE = 100
HIDDEN_SIZE = 256
MAX_TILE_B = 2048   # upper bound on the batch tile (VMEM stays < ~5 MiB)


def _choose_tile_b(B: int) -> int:
    """Pick a batch tile: tight for small B, large (but >=2 tiles) for big B."""
    b8 = ((B + 7) // 8) * 8                      # sublane alignment
    if b8 <= 256:
        return b8                                 # one small tile, no waste
    # Large batches: biggest multiple of 256 that still yields >= 2 grid steps
    # (so the "parallel" grid axis can split across v7x's two TensorCores).
    tile = (b8 // 2 // 256) * 256
    return max(256, min(MAX_TILE_B, tile))


def _discriminator_kernel(x_ref, w1_ref, b1_ref, w2_ref, b2_ref, w3t_ref,
                          b3_ref, o_ref):
    """One batch-tile of the full 3-layer MLP + activations, all in VMEM."""
    # Input cast happens in-kernel (no wrapper-side HBM roundtrip).
    x = x_ref[...].astype(jnp.bfloat16)                       # (TB, 100) bf16

    # Layer 1: Linear(100 -> 256) + LeakyReLU(0.2)  (bf16 MXU, f32 accumulate)
    h1 = jnp.dot(x, w1_ref[...], preferred_element_type=jnp.float32)
    h1 = h1 + b1_ref[...]                                     # (TB, 256) f32
    h1 = jnp.where(h1 > 0, h1, 0.2 * h1)

    # Layer 2: Linear(256 -> 256) + LeakyReLU(0.2)
    h2 = jnp.dot(h1.astype(jnp.bfloat16), w2_ref[...],
                 preferred_element_type=jnp.float32)
    h2 = h2 + b2_ref[...]                                     # (TB, 256) f32
    h2 = jnp.where(h2 > 0, h2, 0.2 * h2)

    # Layer 3: Linear(256 -> 1) + Sigmoid, computed as a (1, TB) row so the
    # store is lane-dense (batch packed on lanes), no wasted output columns.
    logits = jax.lax.dot_general(
        w3t_ref[...], h2.astype(jnp.bfloat16),                # (1,256) . (TB,256)^T
        dimension_numbers=(((1,), (1,)), ((), ())),
        preferred_element_type=jnp.float32)                   # (1, TB) f32
    logits = logits + b3_ref[...]                             # + scalar bias
    probs = 1.0 / (1.0 + jnp.exp(-logits))                    # exp on EUP
    o_ref[...] = probs.reshape(o_ref.shape)


def prepare_params(params):
    """One-time (hoisted) reshaping / transposing / casting of the weights."""
    w1, b1, w2, b2, w3, b3 = params
    w1_p = w1.astype(jnp.bfloat16)                            # (100, 256) bf16
    w2_p = w2.astype(jnp.bfloat16)                            # (256, 256) bf16
    b1_p = b1.reshape(1, HIDDEN_SIZE).astype(jnp.float32)
    b2_p = b2.reshape(1, HIDDEN_SIZE).astype(jnp.float32)
    w3t_p = w3.reshape(HIDDEN_SIZE, 1).T.astype(jnp.bfloat16)  # (1, 256) bf16
    b3_p = b3.reshape(1, 1).astype(jnp.float32)
    return (w1_p, b1_p, w2_p, b2_p, w3t_p, b3_p)


def discriminator_forward(x, prepared_params):
    """x: (B, INPUT_SIZE) float32 -> (B, 1) float32 (sigmoid probabilities)."""
    w1_p, b1_p, w2_p, b2_p, w3t_p, b3_p = prepared_params
    B = x.shape[0]
    tile_b = _choose_tile_b(B)
    num_tiles = pl.cdiv(B, tile_b)
    b_pad = num_tiles * tile_b

    # Only pad the batch remainder (and skip entirely when it divides evenly).
    x_in = x if b_pad == B else jnp.pad(x, ((0, b_pad - B), (0, 0)))

    out = pl.pallas_call(
        _discriminator_kernel,
        out_shape=jax.ShapeDtypeStruct((num_tiles, 1, tile_b), jnp.float32),
        grid_spec=pltpu.PrefetchScalarGridSpec(
            num_scalar_prefetch=0,
            grid=(num_tiles,),
            in_specs=[
                pl.BlockSpec((tile_b, INPUT_SIZE), lambda i: (i, 0)),        # x tile
                pl.BlockSpec((INPUT_SIZE, HIDDEN_SIZE), lambda i: (0, 0)),   # w1
                pl.BlockSpec((1, HIDDEN_SIZE), lambda i: (0, 0)),            # b1
                pl.BlockSpec((HIDDEN_SIZE, HIDDEN_SIZE), lambda i: (0, 0)),  # w2
                pl.BlockSpec((1, HIDDEN_SIZE), lambda i: (0, 0)),            # b2
                pl.BlockSpec((1, HIDDEN_SIZE), lambda i: (0, 0)),            # w3^T
                pl.BlockSpec((1, 1), lambda i: (0, 0)),                      # b3
            ],
            out_specs=pl.BlockSpec((1, 1, tile_b), lambda i: (i, 0, 0)),
        ),
        compiler_params=pltpu.CompilerParams(
            dimension_semantics=("parallel",)),
    )(x_in, w1_p, b1_p, w2_p, b2_p, w3t_p, b3_p)

    # Lane-packed probabilities -> (B, 1); contiguous slice, no strided gather.
    return out.reshape(-1)[:B].reshape(B, 1)


def init_params(key):
    """Deterministic init mimicking PyTorch nn.Linear (U[-1/sqrt(fan_in), +])."""
    k1, k2, k3, k4, k5, k6 = jax.random.split(key, 6)

    def lin(kw, kb, fan_in, fan_out):
        bound = 1.0 / jnp.sqrt(fan_in)
        w = jax.random.uniform(kw, (fan_in, fan_out), jnp.float32, -bound, bound)
        b = jax.random.uniform(kb, (fan_out,), jnp.float32, -bound, bound)
        return w, b

    w1, b1 = lin(k1, k2, INPUT_SIZE, HIDDEN_SIZE)
    w2, b2 = lin(k3, k4, HIDDEN_SIZE, HIDDEN_SIZE)
    w3, b3 = lin(k5, k6, HIDDEN_SIZE, 1)
    return (w1, b1, w2, b2, w3, b3)


def reference_forward(x, params):
    """Pure-JAX (f32) reference for correctness checking."""
    w1, b1, w2, b2, w3, b3 = params
    h = x @ w1 + b1
    h = jnp.where(h > 0, h, 0.2 * h)
    h = h @ w2 + b2
    h = jnp.where(h > 0, h, 0.2 * h)
    h = h @ w3 + b3
    return jax.nn.sigmoid(h)


if __name__ == "__main__":
    key = jax.random.PRNGKey(0)
    kx1, kx2, kp = jax.random.split(key, 3)

    params = init_params(kp)
    prepared = prepare_params(params)

    # Small batch (single tight tile, no padding).
    B1 = 8
    x1 = jax.random.normal(kx1, (B1, INPUT_SIZE), jnp.float32)
    out1 = jax.block_until_ready(discriminator_forward(x1, prepared))
    ref1 = reference_forward(x1, params)
    assert out1.shape == (B1, 1)
    # bf16 matmul inputs vs f32 reference -> relaxed tolerance.
    assert jnp.allclose(out1, ref1, atol=2e-2, rtol=2e-2), "mismatch (B=8)"

    # Ragged multi-tile batch (exercises batch-remainder padding + grid > 1).
    B2 = 600
    x2 = jax.random.normal(kx2, (B2, INPUT_SIZE), jnp.float32)
    out2 = jax.block_until_ready(discriminator_forward(x2, prepared))
    ref2 = reference_forward(x2, params)
    assert out2.shape == (B2, 1)
    assert jnp.allclose(out2, ref2, atol=2e-2, rtol=2e-2), "mismatch (B=600)"

    print("KERNEL_OK")
</pallas_src>

<mosaic_0001>
module attributes {stable_mosaic.version = 11 : i64} {
  func.func @_discriminator_kernel(%arg0: i32, %arg1: memref<8x100xf32, #tpu.memory_space<vmem>>, %arg2: memref<100x256xbf16, #tpu.memory_space<vmem>>, %arg3: memref<1x256xf32, #tpu.memory_space<vmem>>, %arg4: memref<256x256xbf16, #tpu.memory_space<vmem>>, %arg5: memref<1x256xf32, #tpu.memory_space<vmem>>, %arg6: memref<1x256xbf16, #tpu.memory_space<vmem>>, %arg7: memref<1x1xf32, #tpu.memory_space<vmem>>, %arg8: memref<1x1x8xf32, #tpu.memory_space<vmem>>) attributes {dimension_semantics = [#tpu.dimension_semantics<parallel>], iteration_bounds = array<i64: 1>, scalar_prefetch = 0 : i64, scratch_operands = 0 : i64, tpu.core_type = #tpu.core_type<tc>, window_params = [{transform_indices = @transform_0, window_bounds = array<i64: 8, 100>}, {pipeline_mode = #tpu.pipeline_mode<synchronous>, transform_indices = @transform_1, window_bounds = array<i64: 100, 256>}, {pipeline_mode = #tpu.pipeline_mode<synchronous>, transform_indices = @transform_2, window_bounds = array<i64: 1, 256>}, {pipeline_mode = #tpu.pipeline_mode<synchronous>, transform_indices = @transform_3, window_bounds = array<i64: 256, 256>}, {pipeline_mode = #tpu.pipeline_mode<synchronous>, transform_indices = @transform_4, window_bounds = array<i64: 1, 256>}, {pipeline_mode = #tpu.pipeline_mode<synchronous>, transform_indices = @transform_5, window_bounds = array<i64: 1, 256>}, {pipeline_mode = #tpu.pipeline_mode<synchronous>, transform_indices = @transform_6, window_bounds = array<i64: 1, 1>}, {transform_indices = @transform_7, window_bounds = array<i64: 1, 1, 8>}]} {
    %c0 = arith.constant 0 : index
    %c0_0 = arith.constant 0 : index
    %0 = vector.load %arg1[%c0, %c0_0] : memref<8x100xf32, #tpu.memory_space<vmem>>, vector<8x100xf32>
    %1 = arith.truncf %0 : vector<8x100xf32> to vector<8x100xbf16>
    %c0_1 = arith.constant 0 : index
    %c0_2 = arith.constant 0 : index
    %2 = vector.load %arg2[%c0_1, %c0_2] : memref<100x256xbf16, #tpu.memory_space<vmem>>, vector<100x256xbf16>
    %cst = arith.constant dense<0.000000e+00> : vector<8x256xf32>
    %3 = tpu.matmul %1, %2, %cst {dimension_numbers = #tpu.dot_dimension_numbers<[1], [0], [0], [1], [0, 0, 1, 1], [], []>} : vector<8x100xbf16>, vector<100x256xbf16>, vector<8x256xf32> -> vector<8x256xf32>
    %c0_3 = arith.constant 0 : index
    %c0_4 = arith.constant 0 : index
    %4 = vector.load %arg3[%c0_3, %c0_4] : memref<1x256xf32, #tpu.memory_space<vmem>>, vector<1x256xf32>
    %5 = vector.broadcast %4 : vector<1x256xf32> to vector<8x256xf32>
    %6 = arith.addf %3, %5 : vector<8x256xf32>
    %cst_5 = arith.constant 0.000000e+00 : f32
    %7 = vector.broadcast %cst_5 : f32 to vector<8x256xf32>
    %8 = arith.cmpf ogt, %6, %7 : vector<8x256xf32>
    %cst_6 = arith.constant 2.000000e-01 : f32
    %9 = vector.broadcast %cst_6 : f32 to vector<8x256xf32>
    %10 = arith.mulf %9, %6 : vector<8x256xf32>
    %11 = arith.select %8, %6, %10 : vector<8x256xi1>, vector<8x256xf32>
    %12 = arith.truncf %11 : vector<8x256xf32> to vector<8x256xbf16>
    %c0_7 = arith.constant 0 : index
    %c0_8 = arith.constant 0 : index
    %13 = vector.load %arg4[%c0_7, %c0_8] : memref<256x256xbf16, #tpu.memory_space<vmem>>, vector<256x256xbf16>
    %cst_9 = arith.constant dense<0.000000e+00> : vector<8x256xf32>
    %14 = tpu.matmul %12, %13, %cst_9 {dimension_numbers = #tpu.dot_dimension_numbers<[1], [0], [0], [1], [0, 0, 1, 1], [], []>} : vector<8x256xbf16>, vector<256x256xbf16>, vector<8x256xf32> -> vector<8x256xf32>
    %c0_10 = arith.constant 0 : index
    %c0_11 = arith.constant 0 : index
    %15 = vector.load %arg5[%c0_10, %c0_11] : memref<1x256xf32, #tpu.memory_space<vmem>>, vector<1x256xf32>
    %16 = vector.broadcast %15 : vector<1x256xf32> to vector<8x256xf32>
    %17 = arith.addf %14, %16 : vector<8x256xf32>
    %cst_12 = arith.constant 0.000000e+00 : f32
    %18 = vector.broadcast %cst_12 : f32 to vector<8x256xf32>
    %19 = arith.cmpf ogt, %17, %18 : vector<8x256xf32>
    %cst_13 = arith.constant 2.000000e-01 : f32
    %20 = vector.broadcast %cst_13 : f32 to vector<8x256xf32>
    %21 = arith.mulf %20, %17 : vector<8x256xf32>
    %22 = arith.select %19, %17, %21 : vector<8x256xi1>, vector<8x256xf32>
    %c0_14 = arith.constant 0 : index
    %c0_15 = arith.constant 0 : index
    %23 = vector.load %arg6[%c0_14, %c0_15] : memref<1x256xbf16, #tpu.memory_space<vmem>>, vector<1x256xbf16>
    %24 = arith.truncf %22 : vector<8x256xf32> to vector<8x256xbf16>
    %cst_16 = arith.constant dense<0.000000e+00> : vector<1x8xf32>
    %25 = tpu.matmul %23, %24, %cst_16 {dimension_numbers = #tpu.dot_dimension_numbers<[1], [1], [0], [0], [0, 0, 1, 0], [], []>} : vector<1x256xbf16>, vector<8x256xbf16>, vector<1x8xf32> -> vector<1x8xf32>
    %c0_17 = arith.constant 0 : index
    %c0_18 = arith.constant 0 : index
    %26 = vector.load %arg7[%c0_17, %c0_18] : memref<1x1xf32, #tpu.memory_space<vmem>>, vector<1x1xf32>
    %27 = vector.broadcast %26 : vector<1x1xf32> to vector<1x8xf32>
    %28 = arith.addf %25, %27 : vector<1x8xf32>
    %cst_19 = arith.constant 0.000000e+00 : f32
    %29 = vector.broadcast %cst_19 : f32 to vector<1x8xf32>
    %30 = arith.subf %29, %28 : vector<1x8xf32>
    %31 = math.exp %30 : vector<1x8xf32>
    %cst_20 = arith.constant 1.000000e+00 : f32
    %32 = vector.broadcast %cst_20 : f32 to vector<1x8xf32>
    %33 = arith.addf %32, %31 : vector<1x8xf32>
    %cst_21 = arith.constant 1.000000e+00 : f32
    %34 = vector.broadcast %cst_21 : f32 to vector<1x8xf32>
    %35 = arith.divf %34, %33 : vector<1x8xf32>
    %36 = vector.shape_cast %35 : vector<1x8xf32> to vector<1x1x8xf32>
    %c0_22 = arith.constant 0 : index
    %c0_23 = arith.constant 0 : index
    %c0_24 = arith.constant 0 : index
    %37 = vector.load %arg8[%c0_22, %c0_23, %c0_24] : memref<1x1x8xf32, #tpu.memory_space<vmem>>, vector<1x1x8xf32>
    tpu.vector_store %arg8[%c0_22, %c0_23, %c0_24], %36 {strides = array<i32>} : memref<1x1x8xf32, #tpu.memory_space<vmem>>, vector<1x1x8xf32>,
    return
  }
  func.func @transform_0(%arg0: i32) -> (i32, i32) {
    %c0_i32 = arith.constant 0 : i32
    %c0_i32_0 = arith.constant 0 : i32
    return %arg0, %c0_i32 : i32, i32
  }
  func.func @transform_1(%arg0: i32) -> (i32, i32) {
    %c0_i32 = arith.constant 0 : i32
    %c0_i32_0 = arith.constant 0 : i32
    %c0_i32_1 = arith.constant 0 : i32
    return %c0_i32, %c0_i32_0 : i32, i32
  }
  func.func @transform_2(%arg0: i32) -> (i32, i32) {
    %c0_i32 = arith.constant 0 : i32
    %c0_i32_0 = arith.constant 0 : i32
    %c0_i32_1 = arith.constant 0 : i32
    return %c0_i32, %c0_i32_0 : i32, i32
  }
  func.func @transform_3(%arg0: i32) -> (i32, i32) {
    %c0_i32 = arith.constant 0 : i32
    %c0_i32_0 = arith.constant 0 : i32
    %c0_i32_1 = arith.constant 0 : i32
    return %c0_i32, %c0_i32_0 : i32, i32
  }
  func.func @transform_4(%arg0: i32) -> (i32, i32) {
    %c0_i32 = arith.constant 0 : i32
    %c0_i32_0 = arith.constant 0 : i32
    %c0_i32_1 = arith.constant 0 : i32
    return %c0_i32, %c0_i32_0 : i32, i32
  }
  func.func @transform_5(%arg0: i32) -> (i32, i32) {
    %c0_i32 = arith.constant 0 : i32
    %c0_i32_0 = arith.constant 0 : i32
    %c0_i32_1 = arith.constant 0 : i32
    return %c0_i32, %c0_i32_0 : i32, i32
  }
  func.func @transform_6(%arg0: i32) -> (i32, i32) {
    %c0_i32 = arith.constant 0 : i32
    %c0_i32_0 = arith.constant 0 : i32
    %c0_i32_1 = arith.constant 0 : i32
    return %c0_i32, %c0_i32_0 : i32, i32
  }
  func.func @transform_7(%arg0: i32) -> (i32, i32, i32) {
    %c0_i32 = arith.constant 0 : i32
    %c0_i32_0 = arith.constant 0 : i32
    %c0_i32_1 = arith.constant 0 : i32
    return %arg0, %c0_i32, %c0_i32_0 : i32, i32, i32
  }
}

</mosaic_0001>

<bundles_post_ra>
// kernel: tpu_custom_call.1
= control target key start
LH: loop header
LB: loop body
LE: loop exit
PB: predicated region body
PF: predicated region fallthrough
CT: control target
= control target key end

     0   :  { %s950_s0 = inlined_call_operand.hbm [shape: f32[8,100], index: 0, kind: input, shape index: {}]   ;;  %s951_s1 = inlined_call_operand.hbm [shape: bf16[100,256], index: 1, kind: input, shape index: {}]   ;;  %s952_s2 = inlined_call_operand.vmem [shape: f32[1,256], index: 2, kind: input, shape index: {}]   ;;  %s953_s3 = inlined_call_operand.hbm [shape: bf16[256,256], index: 3, kind: input, shape index: {}]   ;;  %s954_s4 = inlined_call_operand.vmem [shape: f32[1,256], index: 4, kind: input, shape index: {}]   ;;  %s955_s5 = inlined_call_operand.vmem [shape: bf16[1,256], index: 5, kind: input, shape index: {}]   ;;  %s956_s6 = inlined_call_operand.<no memory space> [shape: f32[1,1], index: 6, kind: input, shape index: {}]   ;;  %s957_s7 = inlined_call_operand.hbm [shape: f32[1,1,8], index: 7, kind: output, shape index: {}]  }
   0x1   :  { %v12_v0 = vstv %s956_s6 }
   0x2   :  { %13 = vst [vmem:[#allocation2] sm:$0x1] %v12_v0 }
   0x3   :  { %14 = vsyncpa [#allocation4], 0 }
   0x4   :  { %15 = vsyncpa [#allocation7], 0  ;;  %s32_s28 = sshll.u32 %s951_s1, 4  ;;  %s33_s28 = int_to_ptr.hbm [resolvable:$true] %s32_s28 }
   0x5   :  { %16 = vsyncpa [#allocation5], 0  ;;  %s879_s29 = smov [#allocation6]   ;;  %s22_s10 = sshll.u32 %s950_s0, 4  ;;  %s23_s10 = int_to_ptr.hbm [resolvable:$true] %s22_s10 }
   0x6   :  { %s34_s30 = sshll.u32 %s879_s29, 4  ;;  %s880_s11 = smov 128   ;;  %s35_s30 = int_to_ptr.vmem [resolvable:$true] %s34_s30 }
   0x7   :  { %s881_s12 = smov 8   ;;  %s882_s6 = smov [#allocation3]  }
   0x8   :  { %40 = dma.hbm_to_vmem [thread:$0]  %s33_s28, 1664, %s35_s30, [#allocation7], %s880_s11, %s880_s11, %s881_s12  }
   0x9   :  { %s24_s13 = sshll.u32 %s882_s6, 4  ;;  %s47_s16 = sshll.u32 %s953_s3, 4  ;;  %s25_s13 = int_to_ptr.vmem [resolvable:$true] %s24_s13  ;;  %s48_s16 = int_to_ptr.hbm [resolvable:$true] %s47_s16 }
   0xa   :  { %27 = dma.hbm_to_vmem [thread:$0]  %s23_s10, 128, %s25_s13, [#allocation4]  }
   0xb   :  { %s883_s1 = smov [#allocation8]  }
   0xc   :  { %s49_s17 = sshll.u32 %s883_s1, 4  ;;  %s50_s17 = int_to_ptr.vmem [resolvable:$true] %s49_s17 }
   0xd   :  { %55 = dma.hbm_to_vmem [thread:$0]  %s48_s16, 4096, %s50_s17, [#allocation7], %s880_s11, %s880_s11, %s881_s12  }
   0xe   :  { %873 = dma.done.wait [#allocation4], 128  }
   0xf   :  { %874 = vsyncadd [#allocation4], 4294967168 }
  0x10   :  { %875 = dma.done.wait [#allocation7], 5760  }
  0x11   :  { %876 = vsyncadd [#allocation7], 4294961536  ;;  %v89_v1 = vld [vmem:[#allocation6 + $0x60] sm:$0x33]  ;;  %vm165_vm0 = vcmask 1041408   ;;  %vm161_vm1 = vcmask 818176  }
  0x12   :  { %v133_v2 = vunpack.c.l.b16 %v89_v1  ;;  %v134_v3 = vunpack.c.h.b16 %v89_v1  ;;  %v585_v4 = vld [vmem:[#allocation6 + $0x50] sm:$0xf]  ;;  %v732_v7 = vld [vmem:[#allocation6 + $0x54] sm:$0xf0]  ;;  %v731_v8 = vld [vmem:[#allocation6 + $0x54] sm:$0xf] }
  0x13   :  { %v587_v9 = vld [vmem:[#allocation6 + $0x58] sm:$0xf0]  ;;  %v586_v12 = vor.u32 %v732_v7, %v585_v4  ;;  %v577_v14 = vld [vmem:[#allocation6 + $0x40] sm:$0xf]  ;;  %v730_v15 = vld [vmem:[#allocation6 + $0x44] sm:$0xf0] }
  0x14   :  { %v147_v5 = vpack.c.b16 %v133_v2, %v133_v2  ;;  %v148_v6 = vpack.c.b16 %v134_v3, %v134_v3  ;;  %v590_v13 = vor.u32 %v731_v8, %v587_v9  ;;  %v729_v16 = vld [vmem:[#allocation6 + $0x44] sm:$0xf]  ;;  %v579_v17 = vld [vmem:[#allocation6 + $0x48] sm:$0xf0]  ;;  %v651_v18 = vld [vmem:[#allocation8 + $0x70] sm:$0xf]  ;;  %v578_v21 = vor.u32 %v730_v15, %v577_v14 }
  0x15   :  { %v748_v19 = vld [vmem:[#allocation8 + $0x74] sm:$0xf0]  ;;  %v715_v20 = vld [vmem:[#allocation8 + $0xf0] sm:$0xf]  ;;  %v582_v22 = vor.u32 %v729_v16, %v579_v17  ;;  %v569_v23 = vld [vmem:[#allocation6 + $0x30] sm:$0xf] }
  0x16   :  { %v167_v10 = vsel %vm165_vm0, %v147_v5, 0  ;;  %v170_v11 = vsel %vm165_vm0, %v148_v6, 0  ;;  %v728_v24 = vld [vmem:[#allocation6 + $0x34] sm:$0xf0]  ;;  %v652_v25 = vor.u32 %v748_v19, %v651_v18  ;;  %v764_v26 = vld [vmem:[#allocation8 + $0xf4] sm:$0xf0] }
  0x17   :  { %173 = vmatpush.bf16.msra.mxu0 %v167_v10  ;;  %186 = vmatpush.bf16.msra.mxu1 %v170_v11  ;;  %v727_v27 = vld [vmem:[#allocation6 + $0x34] sm:$0xf]  ;;  %v571_v28 = vld [vmem:[#allocation6 + $0x38] sm:$0xf0]  ;;  %v716_v29 = vor.u32 %v764_v26, %v715_v20  ;;  %v643_v30 = vld [vmem:[#allocation8 + $0x60] sm:$0xf]  ;;  %v570_v38 = vor.u32 %v728_v24, %v569_v23 }
  0x18   :  { %404 = vmatpush.bf16.msra.mxu2 %v652_v25  ;;  %v746_v31 = vld [vmem:[#allocation8 + $0x64] sm:$0xf0]  ;;  %v707_v32 = vld [vmem:[#allocation8 + $0xe0] sm:$0xf]  ;;  %v561_v34 = vld [vmem:[#allocation6 + $0x20] sm:$0xf]  ;;  %v574_v39 = vor.u32 %v727_v27, %v571_v28 }
  0x19   :  { %v762_v33 = vld [vmem:[#allocation8 + $0xe4] sm:$0xf0]  ;;  %v726_v35 = vld [vmem:[#allocation6 + $0x24] sm:$0xf0]  ;;  %417 = vmatpush.bf16.msra.mxu3 %v716_v29  ;;  %v644_v36 = vor.u32 %v746_v31, %v643_v30  ;;  %v725_v40 = vld [vmem:[#allocation6 + $0x24] sm:$0xf] }
  0x1a   :  { %v708_v37 = vor.u32 %v762_v33, %v707_v32  ;;  %v635_v41 = vld [vmem:[#allocation8 + $0x50] sm:$0xf]  ;;  %v744_v42 = vld [vmem:[#allocation8 + $0x54] sm:$0xf0]  ;;  %v563_v43 = vld [vmem:[#allocation6 + $0x28] sm:$0xf0]  ;;  %v562_v50 = vor.u32 %v726_v35, %v561_v34 }
  0x1b   :  { %174 = vmatpush.bf16.msra.mxu0 %v586_v12  ;;  %187 = vmatpush.bf16.msra.mxu1 %v590_v13  ;;  %v699_v44 = vld [vmem:[#allocation8 + $0xd0] sm:$0xf]  ;;  %v760_v45 = vld [vmem:[#allocation8 + $0xd4] sm:$0xf0]  ;;  %v636_v46 = vor.u32 %v744_v42, %v635_v41  ;;  %v627_v48 = vld [vmem:[#allocation8 + $0x40] sm:$0xf]  ;;  %v566_v51 = vor.u32 %v725_v40, %v563_v43 }
  0x1c   :  { %405 = vmatpush.bf16.msra.mxu2 %v644_v36  ;;  %v700_v47 = vor.u32 %v760_v45, %v699_v44  ;;  %v742_v49 = vld [vmem:[#allocation8 + $0x44] sm:$0xf0]  ;;  %v691_v53 = vld [vmem:[#allocation8 + $0xc0] sm:$0xf]  ;;  %v724_v55 = vld [vmem:[#allocation6 + $0x14] sm:$0xf0] }
  0x1d   :  { %418 = vmatpush.bf16.msra.mxu3 %v708_v37  ;;  %v553_v52 = vld [vmem:[#allocation6 + $0x10] sm:$0xf]  ;;  %v723_v56 = vld [vmem:[#allocation6 + $0x14] sm:$0xf]  ;;  %v555_v57 = vld [vmem:[#allocation6 + $0x18] sm:$0xf0]  ;;  %v628_v58 = vor.u32 %v742_v49, %v627_v48 }
  0x1e   :  { %v758_v54 = vld [vmem:[#allocation8 + $0xc4] sm:$0xf0]  ;;  %v545_v59 = vld [vmem:[#allocation6] sm:$0xf]  ;;  %v619_v61 = vld [vmem:[#allocation8 + $0x30] sm:$0xf]  ;;  %v554_v63 = vor.u32 %v724_v55, %v553_v52  ;;  %v558_v0 = vor.u32 %v723_v56, %v555_v57 }
  0x1f   :  { %175 = vmatpush.bf16.msra.mxu0 %v578_v21  ;;  %188 = vmatpush.bf16.msra.mxu1 %v582_v22  ;;  %v692_v60 = vor.u32 %v758_v54, %v691_v53  ;;  %v740_v62 = vld [vmem:[#allocation8 + $0x34] sm:$0xf0]  ;;  %v722_v1 = vld [vmem:[#allocation6 + $0x4] sm:$0xf0]  ;;  %v683_v2 = vld [vmem:[#allocation8 + $0xb0] sm:$0xf] }
  0x20   :  { %406 = vmatpush.bf16.msra.mxu2 %v636_v46  ;;  %v756_v3 = vld [vmem:[#allocation8 + $0xb4] sm:$0xf0]  ;;  %v721_v4 = vld [vmem:[#allocation6 + $0x4] sm:$0xf]  ;;  %v547_v5 = vld [vmem:[#allocation6 + $0x8] sm:$0xf0]  ;;  %v620_v10 = vor.u32 %v740_v62, %v619_v61  ;;  %v546_v14 = vor.u32 %v722_v1, %v545_v59 }
  0x21   :  { %419 = vmatpush.bf16.msra.mxu3 %v700_v47  ;;  %v747_v6 = vld [vmem:[#allocation8 + $0x74] sm:$0xf]  ;;  %v653_v7 = vld [vmem:[#allocation8 + $0x78] sm:$0xf0]  ;;  %v684_v11 = vor.u32 %v756_v3, %v683_v2  ;;  %v611_v12 = vld [vmem:[#allocation8 + $0x20] sm:$0xf]  ;;  %v550_v15 = vor.u32 %v721_v4, %v547_v5 }
  0x22   :  { %v763_v8 = vld [vmem:[#allocation8 + $0xf4] sm:$0xf]  ;;  %v717_v9 = vld [vmem:[#allocation8 + $0xf8] sm:$0xf0]  ;;  %v738_v13 = vld [vmem:[#allocation8 + $0x24] sm:$0xf0]  ;;  %v656_v17 = vor.u32 %v747_v6, %v653_v7 }
  0x23   :  { %176 = vmatpush.bf16.msra.mxu0 %v570_v38  ;;  %189 = vmatpush.bf16.msra.mxu1 %v574_v39  ;;  %v75_v16 = vld [vmem:[#allocation3] sm:$0xff]  ;;  %v720_v18 = vor.u32 %v763_v8, %v717_v9  ;;  %v745_v19 = vld [vmem:[#allocation8 + $0x64] sm:$0xf]  ;;  %v675_v20 = vld [vmem:[#allocation8 + $0xa0] sm:$0xf]  ;;  %v612_v25 = vor.u32 %v738_v13, %v611_v12  ;;  %s532_s23 = sshll.u32 %s957_s7, 4  ;;  %s533_s23 = int_to_ptr.hbm [resolvable:$true] %s532_s23 }
  0x24   :  { %407 = vmatpush.bf16.msra.mxu2 %v628_v58  ;;  %v754_v21 = vld [vmem:[#allocation8 + $0xa4] sm:$0xf0]  ;;  %v645_v22 = vld [vmem:[#allocation8 + $0x68] sm:$0xf0]  ;;  %v761_v23 = vld [vmem:[#allocation8 + $0xe4] sm:$0xf]  ;;  %v76_v26 = vpack.c.bf16 %v75_v16, %v75_v16 }
  0x25   :  { %420 = vmatpush.bf16.msra.mxu3 %v692_v60  ;;  %v709_v24 = vld [vmem:[#allocation8 + $0xe8] sm:$0xf0]  ;;  %v676_v27 = vor.u32 %v754_v21, %v675_v20  ;;  %v648_v28 = vor.u32 %v745_v19, %v645_v22  ;;  %v743_v30 = vld [vmem:[#allocation8 + $0x54] sm:$0xf]  ;;  %v637_v31 = vld [vmem:[#allocation8 + $0x58] sm:$0xf0] }
  0x26   :  { %v712_v29 = vor.u32 %v761_v23, %v709_v24  ;;  %v759_v32 = vld [vmem:[#allocation8 + $0xd4] sm:$0xf]  ;;  %v701_v33 = vld [vmem:[#allocation8 + $0xd8] sm:$0xf0]  ;;  %v640_v34 = vor.u32 %v743_v30, %v637_v31  ;;  %v741_v36 = vld [vmem:[#allocation8 + $0x44] sm:$0xf] }
  0x27   :  { %177 = vmatpush.bf16.msra.mxu0 %v562_v50  ;;  %190 = vmatpush.bf16.msra.mxu1 %v566_v51  ;;  %v704_v35 = vor.u32 %v759_v32, %v701_v33  ;;  %v629_v37 = vld [vmem:[#allocation8 + $0x48] sm:$0xf0]  ;;  %v757_v38 = vld [vmem:[#allocation8 + $0xc4] sm:$0xf]  ;;  %v739_v42 = vld [vmem:[#allocation8 + $0x34] sm:$0xf] }
  0x28   :  { %408 = vmatpush.bf16.msra.mxu2 %v620_v10  ;;  %v693_v39 = vld [vmem:[#allocation8 + $0xc8] sm:$0xf0]  ;;  %v632_v40 = vor.u32 %v741_v36, %v629_v37  ;;  %v621_v43 = vld [vmem:[#allocation8 + $0x38] sm:$0xf0]  ;;  %v755_v44 = vld [vmem:[#allocation8 + $0xb4] sm:$0xf] }
  0x29   :  { %421 = vmatpush.bf16.msra.mxu3 %v684_v11  ;;  %v696_v41 = vor.u32 %v757_v38, %v693_v39  ;;  %v685_v45 = vld [vmem:[#allocation8 + $0xb8] sm:$0xf0]  ;;  %v624_v46 = vor.u32 %v739_v42, %v621_v43  ;;  %v737_v48 = vld [vmem:[#allocation8 + $0x24] sm:$0xf]  ;;  %v613_v49 = vld [vmem:[#allocation8 + $0x28] sm:$0xf0] }
  0x2a   :  { %v688_v47 = vor.u32 %v755_v44, %v685_v45  ;;  %v753_v50 = vld [vmem:[#allocation8 + $0xa4] sm:$0xf]  ;;  %v677_v51 = vld [vmem:[#allocation8 + $0xa8] sm:$0xf0]  ;;  %v616_v52 = vor.u32 %v737_v48, %v613_v49  ;;  %v603_v54 = vld [vmem:[#allocation8 + $0x10] sm:$0xf] }
  0x2b   :  { %178 = vmatpush.bf16.msra.mxu0 %v554_v63  ;;  %191 = vmatpush.bf16.msra.mxu1 %v558_v0  ;;  %v680_v53 = vor.u32 %v753_v50, %v677_v51  ;;  %v736_v55 = vld [vmem:[#allocation8 + $0x14] sm:$0xf0]  ;;  %v667_v56 = vld [vmem:[#allocation8 + $0x90] sm:$0xf]  ;;  %v735_v59 = vld [vmem:[#allocation8 + $0x14] sm:$0xf] }
  0x2c   :  { %409 = vmatpush.bf16.msra.mxu2 %v612_v25  ;;  %v604_v57 = vor.u32 %v736_v55, %v603_v54  ;;  %v752_v58 = vld [vmem:[#allocation8 + $0x94] sm:$0xf0]  ;;  %v605_v61 = vld [vmem:[#allocation8 + $0x18] sm:$0xf0]  ;;  %v751_v62 = vld [vmem:[#allocation8 + $0x94] sm:$0xf] }
  0x2d   :  { %422 = vmatpush.bf16.msra.mxu3 %v676_v27  ;;  %v668_v60 = vor.u32 %v752_v58, %v667_v56  ;;  %v669_v63 = vld [vmem:[#allocation8 + $0x98] sm:$0xf0]  ;;  %v608_v0 = vor.u32 %v735_v59, %v605_v61  ;;  %v595_v2 = vld [vmem:[#allocation8] sm:$0xf]  ;;  %v734_v3 = vld [vmem:[#allocation8 + $0x4] sm:$0xf0] }
  0x2e   :  { %v672_v1 = vor.u32 %v751_v62, %v669_v63  ;;  %v659_v4 = vld [vmem:[#allocation8 + $0x80] sm:$0xf]  ;;  %v596_v5 = vor.u32 %v734_v3, %v595_v2  ;;  %v750_v6 = vld [vmem:[#allocation8 + $0x84] sm:$0xf0]  ;;  %v733_v7 = vld [vmem:[#allocation8 + $0x4] sm:$0xf] }
  0x2f   :  { %179 = vmatpush.bf16.msra.mxu0 %v546_v14  ;;  %192 = vmatpush.bf16.msra.mxu1 %v550_v15  ;;  %v597_v8 = vld [vmem:[#allocation8 + $0x8] sm:$0xf0]  ;;  %v660_v9 = vor.u32 %v750_v6, %v659_v4  ;;  %v749_v11 = vld [vmem:[#allocation8 + $0x84] sm:$0xf]  ;;  %v884_v31 = vmov 0   ;;  %vm523_vm9 = vcmask 57344  }
  0x30   :  { %410 = vmatpush.bf16.msra.mxu2 %v604_v57  ;;  %v600_v10 = vor.u32 %v733_v7, %v597_v8  ;;  %v661_v12 = vld [vmem:[#allocation8 + $0x88] sm:$0xf0]  ;;  %v90_v14 = vld [vmem:[%s952_s2] sm:$0x3]  ;;  %772 = vset.pattern.permute.xlu0 %v884_v31 }
  0x31   :  { %423 = vmatpush.bf16.msra.mxu3 %v668_v60  ;;  %v664_v13 = vor.u32 %v749_v11, %v661_v12  ;;  %v92_v15 = vperm.slane %v90_v14, 0  ;;  %v93_v16 = vperm.slane %v90_v14, 1  ;;  %v465_v30 = vld [vmem:[#allocation2] sm:$0x1]  ;;  %v238_v32 = vld [vmem:[%s954_s4] sm:$0x3] }
  0x32   :  { %591 = vmatmul.msk.bf16.vlgmr.msra.gmra.mxu0 %vm161_vm1, %v76_v26  ;;  %592 = vmatmul.msk.bf16.vlgmr.msra.gmra.mxu1 %vm161_vm1, %v76_v26  ;;  %v241_v33 = vperm.slane %v238_v32, 1  ;;  %v240_v37 = vperm.slane %v238_v32, 0  ;;  %s885_s4 = smov [#allocation9]  }
  0x33   :  { %430 = vmatpush.bf16.msrb.mxu0 %v656_v17  ;;  %443 = vmatpush.bf16.msrb.mxu1 %v720_v18 }
  0x34   :  { %411 = vmatpush.bf16.msra.mxu2 %v596_v5  ;;  %468 = vperm.xlu0 %772, %v465_v30  }
  0x35   :  { %424 = vmatpush.bf16.msra.mxu3 %v660_v9 }
  0x37   :  { %431 = vmatpush.bf16.msrb.mxu0 %v648_v28  ;;  %444 = vmatpush.bf16.msrb.mxu1 %v712_v29  ;;  %v462_v29 = vld [vmem:[%s955_s5] sm:$0x3]  ;;  %s530_s5 = sshll.u32 %s885_s4, 4  ;;  %s531_s5 = int_to_ptr.vmem [resolvable:$true] %s530_s5 }
  0x38   :  { %473 = vst [vmem:[#allocation1] ss:$9 sm:$0xff] %v462_v29 }
  0x3b   :  { %432 = vmatpush.bf16.msrb.mxu0 %v640_v34  ;;  %445 = vmatpush.bf16.msrb.mxu1 %v704_v35 }
  0x3f   :  { %433 = vmatpush.bf16.msrb.mxu0 %v632_v40  ;;  %446 = vmatpush.bf16.msrb.mxu1 %v696_v41  ;;  %v474_v54 = vld [vmem:[#allocation1] sm:$0xff] }
  0x43   :  { %434 = vmatpush.bf16.msrb.mxu0 %v624_v46  ;;  %447 = vmatpush.bf16.msrb.mxu1 %v688_v47 }
  0x47   :  { %435 = vmatpush.bf16.msrb.mxu0 %v616_v52  ;;  %448 = vmatpush.bf16.msrb.mxu1 %v680_v53  ;;  %v475_v53 = vld [vmem:[#allocation1 + $0x9] sm:$0xff] }
  0x4b   :  { %436 = vmatpush.bf16.msrb.mxu0 %v608_v0  ;;  %449 = vmatpush.bf16.msrb.mxu1 %v672_v1 }
  0x4f   :  { %437 = vmatpush.bf16.msrb.mxu0 %v600_v10  ;;  %450 = vmatpush.bf16.msrb.mxu1 %v664_v13 }
  0xa6   :  { %v469_v55 = vpop.permute.xlu0 %468 }
  0xa7   :  { %v471_v57 = vperm.slane %v469_v55, 0 }
  0xaf   :  { %v181_v17 = vpop.f32.mrf.mxu0  ;;  %v194_v18 = vpop.f32.mrf.mxu1 }
  0xb0   :  { %v182_v19 = vadd.f32 %v181_v17, %v92_v15  ;;  %v195_v20 = vadd.f32 %v194_v18, %v93_v16 }
  0xb2   :  { %v200_v21 = vmul.f32 0.2, %v182_v19  ;;  %v201_v22 = vmul.f32 0.2, %v195_v20  ;;  %vm198_vm2 = vcmp.gt.f32.partialorder %v182_v19, 0.0  ;;  %vm199_vm3 = vcmp.gt.f32.partialorder %v195_v20, 0.0 }
  0xb4   :  { %v202_v23 = vsel %vm198_vm2, %v182_v19, %v200_v21  ;;  %v203_v24 = vsel %vm199_vm3, %v195_v20, %v201_v22 }
  0xb5   :  { %v204_v25 = vpack.c.bf16 %v202_v23, %v202_v23  ;;  %v205_v26 = vpack.c.bf16 %v203_v24, %v203_v24 }
  0xb7   :  { %v183_v27 = vpop.f32.mrf.mxu0  ;;  %v196_v28 = vpop.f32.mrf.mxu1  ;;  %412 = vmatmul.bf16.vlgmr.msra.gmra.mxu2 %v204_v25  ;;  %425 = vmatmul.bf16.vlgmr.msra.gmra.mxu3 %v205_v26 }
  0xb8   :  { %438 = vmatmul.bf16.vlgmr.msrb.gmra.mxu0 %v204_v25  ;;  %451 = vmatmul.bf16.vlgmr.msrb.gmra.mxu1 %v205_v26 }
 0x135   :  { %v439_v34 = vpop.f32.mrf.mxu0  ;;  %v452_v35 = vpop.f32.mrf.mxu1 }
 0x136   :  { %v440_v36 = vadd.f32 %v439_v34, %v241_v33 }
 0x138   :  { %v453_v38 = vadd.f32 %v452_v35, %v440_v36 }
 0x13a   :  { %v459_v39 = vmul.f32 0.2, %v453_v38  ;;  %v413_v40 = vpop.f32.mrf.mxu2  ;;  %v426_v41 = vpop.f32.mrf.mxu3  ;;  %vm457_vm4 = vcmp.gt.f32.partialorder %v453_v38, 0.0 }
 0x13b   :  { %v414_v42 = vadd.f32 %v413_v40, %v240_v37 }
 0x13c   :  { %v461_v43 = vsel %vm457_vm4, %v453_v38, %v459_v39 }
 0x13d   :  { %v427_v44 = vadd.f32 %v426_v41, %v414_v42  ;;  %v441_v45 = vpop.f32.mrf.mxu0  ;;  %v454_v46 = vpop.f32.mrf.mxu1  ;;  %v464_v47 = vpack.c.bf16 %v461_v43, %v461_v43 }
 0x13f   :  { %v458_v48 = vmul.f32 0.2, %v427_v44  ;;  %498 = vmatpush.bf16.xpose.msrb.mxu3 %v464_v47  ;;  %vm456_vm5 = vcmp.gt.f32.partialorder %v427_v44, 0.0 }
 0x141   :  { %v460_v49 = vsel %vm456_vm5, %v427_v44, %v458_v48 }
 0x142   :  { %v415_v50 = vpop.f32.mrf.mxu2  ;;  %v428_v51 = vpop.f32.mrf.mxu3  ;;  %v463_v52 = vpack.c.bf16 %v460_v49, %v460_v49 }
 0x144   :  { %485 = vmatpush.bf16.xpose.msrb.mxu2 %v463_v52 }
 0x146   :  { %499 = vmatmul.bf16.vlgmr.msrb.gmra.mxu3 %v475_v53 }
 0x14b   :  { %486 = vmatmul.bf16.vlgmr.msrb.gmra.mxu2 %v474_v54 }
 0x1c9   :  { %v500_v56 = vpop.f32.mrf.mxu3 }
 0x1ce   :  { %v487_v58 = vpop.f32.mrf.mxu2 }
 0x1cf   :  { %v488_v59 = vadd.f32 %v487_v58, %v471_v57 }
 0x1d1   :  { %v501_v60 = vadd.f32 %v500_v56, %v488_v59  ;;  %v502_v61 = vpop.f32.mrf.mxu3 }
 0x1d3   :  { %v504_v62 = vsub.f32 0.0, %v501_v60 }
 0x1d5   :  { %v505_v63 = vmul.f32 1.442695, %v504_v62 }
 0x1d6   :  { %v489_v0 = vpop.f32.mrf.mxu2 }
 0x1d7   :  { %773 = vpow2.f32 %v505_v63 }
 0x1dd   :  { %v774_v1 = vpop.eup %773 }
 0x1de   :  { %v507_v2 = vadd.f32 1.0, %v774_v1 }
 0x1e0   :  { %775 = vrcp.f32 %v507_v2  ;;  %v519_v6 = vand.u32 2147483648, %v507_v2  ;;  %v517_v8 = vand.u32 2147483647, %v507_v2  ;;  %vm513_vm7 = vweird.f32 %v507_v2 }
 0x1e2   :  { %v520_v10 = vor.u32 1.1754944e-38, %v519_v6  ;;  %vm518_vm10 = vcmp.eq.f32.partialorder %v517_v8, 8.507059e+37 }
 0x1e6   :  { %v776_v3 = vpop.eup %775 }
 0x1e7   :  { %v509_v4 = vmul.f32 %v776_v3, %v507_v2  ;;  %vm514_vm6 = vweird.f32 %v776_v3 }
 0x1e8   :  { %vm515_vm8 = vmor %vm513_vm7, %vm514_vm6 }
 0x1e9   :  { %v510_v5 = vsub.f32 1.0, %v509_v4 }
 0x1eb   :  { %v511_v7 = vmul.f32 %v776_v3, %v510_v5 }
 0x1ed   :  { %v512_v9 = vadd.f32 %v776_v3, %v511_v7 }
 0x1ef   :  { %v516_v11 = vsel %vm515_vm8, %v776_v3, %v512_v9 }
 0x1f0   :  { %v521_v12 = vsel %vm518_vm10, %v520_v10, %v516_v11 }
 0x1f1   :  { %524 = vst.msk [vmem:[#allocation9] sm:$0x1] %vm523_vm9, %v521_v12 }
 0x1f2   :  { %535 = dma.vmem_to_hbm [thread:$0]  %s531_s5, 16, %s533_s23, [#allocation5]  }
 0x1f3   :  { %877 = dma.done.wait [#allocation5], 16  }
 0x1f4   :  { %878 = vsyncadd [#allocation5], 4294967280 }
 0x1f5   :  { %540 = vsyncpa [#allocation4], 1 }
 0x1f6   :  { %541 = vsyncpa [#allocation7], 1 }
 0x1f7   :  { %542 = vsyncpa [#allocation5], 1 }

</bundles_post_ra>
